<compile_context>
chip_gen: v5e
topology: v5e:2x2
jax: 0.10.0
libtpu: 0.0.40
codegen_flags: <defaults>
</compile_context>

<pallas_src>
import math
from functools import partial

import jax
import jax.numpy as jnp
from jax import lax
from jax.experimental import pallas as pl
from jax.experimental.pallas import tpu as pltpu

N_LANDMARK = 51
WING_W = 10.0
WING_EPS = 2.0
_WING_C = WING_W * (1.0 - math.log(1.0 + WING_W / WING_EPS))
_TB_MAX = 1024  # rows per tile; multiple of 8, small vs. 32 MiB scoped VMEM


def _pfld_loss_kernel(lgt_ref, lpred_ref, gpred_ref, ggt_ref,
                      gaze_out_ref, lad_out_ref,
                      *, batch, gaze_dim, block_rows, mask_rows):
    i = pl.program_id(0)
    n = pl.num_programs(0)

    # ---- init resident accumulators (outputs) on the first tile ----------
    @pl.when(i == 0)
    def _init():
        lad_out_ref[...] = jnp.zeros_like(lad_out_ref)
        gaze_out_ref[...] = jnp.zeros_like(gaze_out_ref)

    w = jnp.float32(WING_W)
    inv_eps = jnp.float32(1.0 / WING_EPS)
    c = jnp.float32(_WING_C)

    # ---- wing loss on this batch tile (cast to f32 in-register) ----------
    x = lgt_ref[...].astype(jnp.float32) - lpred_ref[...].astype(jnp.float32)
    ax = jnp.abs(x)
    losses = jnp.where(w > ax, w * jnp.log(1.0 + ax * inv_eps), ax - c)

    # ---- squared gaze error on this batch tile ---------------------------
    d = gpred_ref[...].astype(jnp.float32) - ggt_ref[...].astype(jnp.float32)
    sq = d * d

    # ---- mask rows past the real batch on the (possibly partial) tile ----
    if mask_rows:
        row = i * block_rows + lax.broadcasted_iota(
            jnp.int32, (block_rows, 1), 0)
        valid = row < batch
        losses = jnp.where(valid, losses, 0.0)
        sq = jnp.where(valid, sq, 0.0)

    # ---- lane-dense reductions: sublane reduce, then lane reduce ---------
    lad_tile = jnp.sum(jnp.sum(losses, axis=0, keepdims=True),
                       axis=1, keepdims=True)          # (1, 1)
    mse_tile = jnp.sum(jnp.sum(sq, axis=0, keepdims=True),
                       axis=1, keepdims=True)          # (1, 1)

    lad_out_ref[...] += lad_tile
    gaze_out_ref[...] += mse_tile

    # ---- finalize on the last tile: turn sums into the two means ---------
    @pl.when(i == n - 1)
    def _finalize():
        lad_out_ref[...] = lad_out_ref[...] * jnp.float32(1.0 / batch)
        gaze_out_ref[...] = gaze_out_ref[...] * jnp.float32(
            1000.0 / (batch * gaze_dim))


def pfld_loss(landmark_gt, landmarks, gaze_pred, gaze, *, tile_rows=_TB_MAX):
    """Returns (gaze_loss * 1000, wing_landmark_loss), both f32 scalars.

    `tile_rows` (if it ends up < batch) must be a multiple of 8.
    """
    L = 2 * N_LANDMARK
    landmark_gt = landmark_gt.reshape(-1, L)
    landmarks = landmarks.reshape(-1, L)
    B = landmark_gt.shape[0]
    gaze_pred = gaze_pred.reshape(B, -1)
    gaze = gaze.reshape(B, -1)
    G = gaze.shape[1]

    # Full-batch block when it fits (exempt from the /8 rule), else tile.
    TB = B if B <= tile_rows else tile_rows
    n_tiles = pl.cdiv(B, TB)
    mask_rows = (n_tiles * TB) != B

    kernel = partial(_pfld_loss_kernel, batch=B, gaze_dim=G,
                     block_rows=TB, mask_rows=mask_rows)

    gaze_out, lad_out = pl.pallas_call(
        kernel,
        out_shape=(jax.ShapeDtypeStruct((1, 1), jnp.float32),
                   jax.ShapeDtypeStruct((1, 1), jnp.float32)),
        grid=(n_tiles,),
        in_specs=[
            pl.BlockSpec((TB, L), lambda i: (i, 0)),
            pl.BlockSpec((TB, L), lambda i: (i, 0)),
            pl.BlockSpec((TB, G), lambda i: (i, 0)),
            pl.BlockSpec((TB, G), lambda i: (i, 0)),
        ],
        out_specs=(pl.BlockSpec((1, 1), lambda i: (0, 0)),
                   pl.BlockSpec((1, 1), lambda i: (0, 0))),
        compiler_params=pltpu.CompilerParams(
            dimension_semantics=("arbitrary",)),
    )(landmark_gt, landmarks, gaze_pred, gaze)
    return gaze_out[0, 0], lad_out[0, 0]


def _reference(landmark_gt, landmarks, gaze_pred, gaze):
    """Pure-JAX reference mirroring the PyTorch module."""
    y_pred = landmarks.reshape(-1, N_LANDMARK, 2).astype(jnp.float32)
    y_true = landmark_gt.reshape(-1, N_LANDMARK, 2).astype(jnp.float32)
    x = y_true - y_pred
    ax = jnp.abs(x)
    losses = jnp.where(WING_W > ax, WING_W * jnp.log(1.0 + ax / WING_EPS),
                       ax - _WING_C)
    lad = jnp.mean(jnp.sum(losses, axis=(1, 2)), axis=0)
    mse = jnp.mean((gaze_pred.astype(jnp.float32)
                    - gaze.astype(jnp.float32)) ** 2)
    return mse * 1000.0, lad


if __name__ == "__main__":
    key = jax.random.PRNGKey(0)
    k1, k2, k3, k4 = jax.random.split(key, 4)

    # --- small case (single full-batch block) ---------------------------
    B, G = 2, 2
    landmark_gt = jax.random.normal(k1, (B, 2 * N_LANDMARK), dtype=jnp.float32)
    landmarks = jax.random.normal(k2, (B, 2 * N_LANDMARK), dtype=jnp.float32)
    gaze_pred = jax.random.normal(k3, (B, G), dtype=jnp.float32)
    gaze = jax.random.normal(k4, (B, G), dtype=jnp.float32)

    gaze_loss, lad_loss = pfld_loss(landmark_gt, landmarks, gaze_pred, gaze)
    jax.block_until_ready((gaze_loss, lad_loss))
    ref_gaze, ref_lad = _reference(landmark_gt, landmarks, gaze_pred, gaze)
    assert jnp.allclose(gaze_loss, ref_gaze, rtol=1e-5, atol=1e-5)
    assert jnp.allclose(lad_loss, ref_lad, rtol=1e-5, atol=1e-5)

    # --- tiled + masked-partial-tile case (B=10, TB=8 -> 2 tiles) --------
    B2 = 10
    landmark_gt2 = jax.random.normal(k1, (B2, 2 * N_LANDMARK), dtype=jnp.float32)
    landmarks2 = jax.random.normal(k2, (B2, 2 * N_LANDMARK), dtype=jnp.float32)
    gaze_pred2 = jax.random.normal(k3, (B2, G), dtype=jnp.float32)
    gaze2 = jax.random.normal(k4, (B2, G), dtype=jnp.float32)

    gaze_loss2, lad_loss2 = pfld_loss(landmark_gt2, landmarks2,
                                      gaze_pred2, gaze2, tile_rows=8)
    jax.block_until_ready((gaze_loss2, lad_loss2))
    ref_gaze2, ref_lad2 = _reference(landmark_gt2, landmarks2,
                                     gaze_pred2, gaze2)
    assert jnp.allclose(gaze_loss2, ref_gaze2, rtol=1e-5, atol=1e-5)
    assert jnp.allclose(lad_loss2, ref_lad2, rtol=1e-5, atol=1e-5)

    print("KERNEL_OK")
</pallas_src>

<mosaic_0001>
module attributes {stable_mosaic.version = 11 : i64} {
  func.func @_pfld_loss_kernel(%arg0: i32, %arg1: memref<2x102xf32, #tpu.memory_space<vmem>>, %arg2: memref<2x102xf32, #tpu.memory_space<vmem>>, %arg3: memref<2x2xf32, #tpu.memory_space<vmem>>, %arg4: memref<2x2xf32, #tpu.memory_space<vmem>>, %arg5: memref<1x1xf32, #tpu.memory_space<vmem>>, %arg6: memref<1x1xf32, #tpu.memory_space<vmem>>) attributes {dimension_semantics = [#tpu.dimension_semantics<arbitrary>], iteration_bounds = array<i64: 1>, scalar_prefetch = 0 : i64, scratch_operands = 0 : i64, tpu.core_type = #tpu.core_type<tc>, window_params = [{transform_indices = @transform_0, window_bounds = array<i64: 2, 102>}, {transform_indices = @transform_1, window_bounds = array<i64: 2, 102>}, {transform_indices = @transform_2, window_bounds = array<i64: 2, 2>}, {transform_indices = @transform_3, window_bounds = array<i64: 2, 2>}, {pipeline_mode = #tpu.pipeline_mode<synchronous>, transform_indices = @transform_4, window_bounds = array<i64: 1, 1>}, {pipeline_mode = #tpu.pipeline_mode<synchronous>, transform_indices = @transform_5, window_bounds = array<i64: 1, 1>}]} {
    %c0_i32 = arith.constant 0 : i32
    %0 = arith.cmpi eq, %arg0, %c0_i32 : i32
    %1 = arith.extui %0 : i1 to i32
    %c0_i32_0 = arith.constant 0 : i32
    %2 = arith.cmpi ne, %1, %c0_i32_0 : i32
    scf.if %2 {
      %cst_26 = arith.constant 0.000000e+00 : f32
      %40 = vector.broadcast %cst_26 : f32 to vector<1x1xf32>
      %c0_27 = arith.constant 0 : index
      %c0_28 = arith.constant 0 : index
      %41 = vector.load %arg6[%c0_27, %c0_28] : memref<1x1xf32, #tpu.memory_space<vmem>>, vector<1x1xf32>
      tpu.vector_store %arg6[%c0_27, %c0_28], %40 {strides = array<i32>} : memref<1x1xf32, #tpu.memory_space<vmem>>, vector<1x1xf32>,
      %cst_29 = arith.constant 0.000000e+00 : f32
      %42 = vector.broadcast %cst_29 : f32 to vector<1x1xf32>
      %c0_30 = arith.constant 0 : index
      %c0_31 = arith.constant 0 : index
      %43 = vector.load %arg5[%c0_30, %c0_31] : memref<1x1xf32, #tpu.memory_space<vmem>>, vector<1x1xf32>
      tpu.vector_store %arg5[%c0_30, %c0_31], %42 {strides = array<i32>} : memref<1x1xf32, #tpu.memory_space<vmem>>, vector<1x1xf32>,
    } else {
    }
    %c0 = arith.constant 0 : index
    %c0_1 = arith.constant 0 : index
    %3 = vector.load %arg1[%c0, %c0_1] : memref<2x102xf32, #tpu.memory_space<vmem>>, vector<2x102xf32>
    %c0_2 = arith.constant 0 : index
    %c0_3 = arith.constant 0 : index
    %4 = vector.load %arg2[%c0_2, %c0_3] : memref<2x102xf32, #tpu.memory_space<vmem>>, vector<2x102xf32>
    %5 = arith.subf %3, %4 : vector<2x102xf32>
    %6 = math.absf %5 : vector<2x102xf32>
    %cst = arith.constant 1.000000e+01 : f32
    %7 = vector.broadcast %cst : f32 to vector<2x102xf32>
    %8 = arith.cmpf ogt, %7, %6 : vector<2x102xf32>
    %cst_4 = arith.constant 5.000000e-01 : f32
    %9 = vector.broadcast %cst_4 : f32 to vector<2x102xf32>
    %10 = arith.mulf %6, %9 : vector<2x102xf32>
    %cst_5 = arith.constant 1.000000e+00 : f32
    %11 = vector.broadcast %cst_5 : f32 to vector<2x102xf32>
    %12 = arith.addf %11, %10 : vector<2x102xf32>
    %13 = math.log %12 : vector<2x102xf32>
    %cst_6 = arith.constant 1.000000e+01 : f32
    %14 = vector.broadcast %cst_6 : f32 to vector<2x102xf32>
    %15 = arith.mulf %14, %13 : vector<2x102xf32>
    %cst_7 = arith.constant -7.9175949 : f32
    %16 = vector.broadcast %cst_7 : f32 to vector<2x102xf32>
    %17 = arith.subf %6, %16 : vector<2x102xf32>
    %18 = arith.select %8, %15, %17 : vector<2x102xi1>, vector<2x102xf32>
    %c0_8 = arith.constant 0 : index
    %c0_9 = arith.constant 0 : index
    %19 = vector.load %arg3[%c0_8, %c0_9] : memref<2x2xf32, #tpu.memory_space<vmem>>, vector<2x2xf32>
    %c0_10 = arith.constant 0 : index
    %c0_11 = arith.constant 0 : index
    %20 = vector.load %arg4[%c0_10, %c0_11] : memref<2x2xf32, #tpu.memory_space<vmem>>, vector<2x2xf32>
    %21 = arith.subf %19, %20 : vector<2x2xf32>
    %22 = arith.mulf %21, %21 : vector<2x2xf32>
    %cst_12 = arith.constant dense<0.000000e+00> : vector<102xf32>
    %23 = vector.multi_reduction <add>, %18, %cst_12 [0] : vector<2x102xf32> to vector<102xf32>
    %24 = vector.shape_cast %23 : vector<102xf32> to vector<1x102xf32>
    %cst_13 = arith.constant dense<0.000000e+00> : vector<1xf32>
    %25 = vector.multi_reduction <add>, %24, %cst_13 [1] : vector<1x102xf32> to vector<1xf32>
    %26 = vector.shape_cast %25 : vector<1xf32> to vector<1x1xf32>
    %cst_14 = arith.constant dense<0.000000e+00> : vector<2xf32>
    %27 = vector.multi_reduction <add>, %22, %cst_14 [0] : vector<2x2xf32> to vector<2xf32>
    %28 = vector.shape_cast %27 : vector<2xf32> to vector<1x2xf32>
    %cst_15 = arith.constant dense<0.000000e+00> : vector<1xf32>
    %29 = vector.multi_reduction <add>, %28, %cst_15 [1] : vector<1x2xf32> to vector<1xf32>
    %30 = vector.shape_cast %29 : vector<1xf32> to vector<1x1xf32>
    %c0_16 = arith.constant 0 : index
    %c0_17 = arith.constant 0 : index
    %31 = vector.load %arg6[%c0_16, %c0_17] : memref<1x1xf32, #tpu.memory_space<vmem>>, vector<1x1xf32>
    %32 = arith.addf %31, %26 : vector<1x1xf32>
    %c0_18 = arith.constant 0 : index
    %c0_19 = arith.constant 0 : index
    %33 = vector.load %arg6[%c0_18, %c0_19] : memref<1x1xf32, #tpu.memory_space<vmem>>, vector<1x1xf32>
    tpu.vector_store %arg6[%c0_18, %c0_19], %32 {strides = array<i32>} : memref<1x1xf32, #tpu.memory_space<vmem>>, vector<1x1xf32>,
    %c0_20 = arith.constant 0 : index
    %c0_21 = arith.constant 0 : index
    %34 = vector.load %arg5[%c0_20, %c0_21] : memref<1x1xf32, #tpu.memory_space<vmem>>, vector<1x1xf32>
    %35 = arith.addf %34, %30 : vector<1x1xf32>
    %c0_22 = arith.constant 0 : index
    %c0_23 = arith.constant 0 : index
    %36 = vector.load %arg5[%c0_22, %c0_23] : memref<1x1xf32, #tpu.memory_space<vmem>>, vector<1x1xf32>
    tpu.vector_store %arg5[%c0_22, %c0_23], %35 {strides = array<i32>} : memref<1x1xf32, #tpu.memory_space<vmem>>, vector<1x1xf32>,
    %c0_i32_24 = arith.constant 0 : i32
    %37 = arith.cmpi eq, %arg0, %c0_i32_24 : i32
    %38 = arith.extui %37 : i1 to i32
    %c0_i32_25 = arith.constant 0 : i32
    %39 = arith.cmpi ne, %38, %c0_i32_25 : i32
    scf.if %39 {
      %c0_26 = arith.constant 0 : index
      %c0_27 = arith.constant 0 : index
      %40 = vector.load %arg6[%c0_26, %c0_27] : memref<1x1xf32, #tpu.memory_space<vmem>>, vector<1x1xf32>
      %cst_28 = arith.constant 5.000000e-01 : f32
      %41 = vector.broadcast %cst_28 : f32 to vector<1x1xf32>
      %42 = arith.mulf %40, %41 : vector<1x1xf32>
      %c0_29 = arith.constant 0 : index
      %c0_30 = arith.constant 0 : index
      %43 = vector.load %arg6[%c0_29, %c0_30] : memref<1x1xf32, #tpu.memory_space<vmem>>, vector<1x1xf32>
      tpu.vector_store %arg6[%c0_29, %c0_30], %42 {strides = array<i32>} : memref<1x1xf32, #tpu.memory_space<vmem>>, vector<1x1xf32>,
      %c0_31 = arith.constant 0 : index
      %c0_32 = arith.constant 0 : index
      %44 = vector.load %arg5[%c0_31, %c0_32] : memref<1x1xf32, #tpu.memory_space<vmem>>, vector<1x1xf32>
      %cst_33 = arith.constant 2.500000e+02 : f32
      %45 = vector.broadcast %cst_33 : f32 to vector<1x1xf32>
      %46 = arith.mulf %44, %45 : vector<1x1xf32>
      %c0_34 = arith.constant 0 : index
      %c0_35 = arith.constant 0 : index
      %47 = vector.load %arg5[%c0_34, %c0_35] : memref<1x1xf32, #tpu.memory_space<vmem>>, vector<1x1xf32>
      tpu.vector_store %arg5[%c0_34, %c0_35], %46 {strides = array<i32>} : memref<1x1xf32, #tpu.memory_space<vmem>>, vector<1x1xf32>,
    } else {
    }
    return
  }
  func.func @transform_0(%arg0: i32) -> (i32, i32) {
    %c0_i32 = arith.constant 0 : i32
    %c0_i32_0 = arith.constant 0 : i32
    return %arg0, %c0_i32 : i32, i32
  }
  func.func @transform_1(%arg0: i32) -> (i32, i32) {
    %c0_i32 = arith.constant 0 : i32
    %c0_i32_0 = arith.constant 0 : i32
    return %arg0, %c0_i32 : i32, i32
  }
  func.func @transform_2(%arg0: i32) -> (i32, i32) {
    %c0_i32 = arith.constant 0 : i32
    %c0_i32_0 = arith.constant 0 : i32
    return %arg0, %c0_i32 : i32, i32
  }
  func.func @transform_3(%arg0: i32) -> (i32, i32) {
    %c0_i32 = arith.constant 0 : i32
    %c0_i32_0 = arith.constant 0 : i32
    return %arg0, %c0_i32 : i32, i32
  }
  func.func @transform_4(%arg0: i32) -> (i32, i32) {
    %c0_i32 = arith.constant 0 : i32
    %c0_i32_0 = arith.constant 0 : i32
    %c0_i32_1 = arith.constant 0 : i32
    return %c0_i32, %c0_i32_0 : i32, i32
  }
  func.func @transform_5(%arg0: i32) -> (i32, i32) {
    %c0_i32 = arith.constant 0 : i32
    %c0_i32_0 = arith.constant 0 : i32
    %c0_i32_1 = arith.constant 0 : i32
    return %c0_i32, %c0_i32_0 : i32, i32
  }
}

</mosaic_0001>

<bundles_post_ra>
// kernel: tpu_custom_call.1
= control target key start
LH: loop header
LB: loop body
LE: loop exit
PB: predicated region body
PF: predicated region fallthrough
CT: control target
= control target key end

     0   :  { %11 = vsyncpa [#allocation3], 0  ;;  %s357_s0 = inlined_call_operand.hbm [shape: f32[2,102], index: 0, kind: input, shape index: {}]   ;;  %s358_s1 = inlined_call_operand.hbm [shape: f32[2,102], index: 1, kind: input, shape index: {}]   ;;  %s359_s2 = inlined_call_operand.hbm [shape: f32[2,2], index: 2, kind: input, shape index: {}]   ;;  %s360_s3 = inlined_call_operand.vmem [shape: f32[2,2], index: 3, kind: input, shape index: {}]   ;;  %s361_s4 = inlined_call_operand.hbm [shape: f32[1,1], index: 4, kind: output, shape index: {0}]   ;;  %s362_s5 = inlined_call_operand.hbm [shape: f32[1,1], index: 5, kind: output, shape index: {1}]  }
   0x1   :  { %12 = vsyncpa [#allocation6], 0 }
   0x2   :  { %13 = vsyncpa [#allocation4], 0  ;;  %s31_s20 = sshll.u32 %s358_s1, 4  ;;  %s32_s20 = int_to_ptr.hbm [resolvable:$true] %s31_s20 }
   0x3   :  { %14 = vsyncpa [#allocation10], 0  ;;  %s297_s21 = smov [#allocation5]   ;;  %s20_s25 = sshll.u32 %s357_s0, 4  ;;  %s21_s25 = int_to_ptr.hbm [resolvable:$true] %s20_s25 }
   0x4   :  { %s33_s22 = sshll.u32 %s297_s21, 4  ;;  %s298_s26 = smov [#allocation2]   ;;  %s34_s22 = int_to_ptr.vmem [resolvable:$true] %s33_s22 }
   0x5   :  { %36 = dma.hbm_to_vmem [thread:$0]  %s32_s20, 32, %s34_s22, [#allocation6]  }
   0x6   :  { %s22_s27 = sshll.u32 %s298_s26, 4  ;;  %s42_s30 = sshll.u32 %s359_s2, 4  ;;  %s23_s27 = int_to_ptr.vmem [resolvable:$true] %s22_s27  ;;  %s43_s30 = int_to_ptr.hbm [resolvable:$true] %s42_s30 }
   0x7   :  { %25 = dma.hbm_to_vmem [thread:$0]  %s21_s25, 32, %s23_s27, [#allocation3]  }
   0x8   :  { %s299_s1 = smov [#allocation7]  }
   0x9   :  { %s44_s6 = sshll.u32 %s299_s1, 4  ;;  %s45_s6 = int_to_ptr.vmem [resolvable:$true] %s44_s6 }
   0xa   :  { %47 = dma.hbm_to_vmem [thread:$0]  %s43_s30, 32, %s45_s6, [#allocation6]  }
   0xb   :  { %289 = dma.done.wait [#allocation3], 32  }
   0xc   :  { %290 = vsyncadd [#allocation3], 4294967264 }
   0xd   :  { %291 = dma.done.wait [#allocation6], 64  }
   0xe   :  { %292 = vsyncadd [#allocation6], 4294967232  ;;  %v69_v0 = vld [vmem:[#allocation2] sm:$0x3]  ;;  %v70_v1 = vld [vmem:[#allocation5] sm:$0x3] }
   0xf   :  { %v71_v2 = vsub.f32 %v69_v0, %v70_v1  ;;  %v81_v3 = vld [vmem:[#allocation7] sm:$0x3]  ;;  %v82_v4 = vld [vmem:[%s360_s3] sm:$0x3]  ;;  %vm97_vm0 = vcmask 9216   ;;  %vm66_vm1 = vcmask 0  }
  0x10   :  { %v83_v7 = vsub.f32 %v81_v3, %v82_v4  ;;  %v300_v10 = vmov 0.0   ;;  %vm85_vm3 = vcmask 828416   ;;  %vm93_vm4 = vcmask 834560   ;;  %s301_s2 = smov [#allocation9]   ;;  %s143_s10 = sshll.u32 %s362_s5, 4  ;;  %s144_s10 = int_to_ptr.hbm [resolvable:$true] %s143_s10 }
  0x11   :  { %v72_v5 = vand.u32 2147483647, %v71_v2  ;;  %67 = vst.msk [vmem:[#allocation9] sm:$0x1] %vm66_vm1, %v300_v10  ;;  %vm105_vm5 = vcmask 15360   ;;  %s141_s3 = sshll.u32 %s301_s2, 4  ;;  %s142_s3 = int_to_ptr.vmem [resolvable:$true] %s141_s3 }
  0x12   :  { %v84_v9 = vmul.f32 %v83_v7, %v83_v7  ;;  %68 = vst.msk [vmem:[#allocation8] sm:$0x1] %vm66_vm1, %v300_v10  ;;  %s302_s11 = smov [#allocation8]   ;;  %s132_s15 = sshll.u32 %s361_s4, 4  ;;  %s133_s15 = int_to_ptr.hbm [resolvable:$true] %s132_s15 }
  0x13   :  { %v74_v6 = vmul.f32 0.5, %v72_v5  ;;  %v160_v14 = vadd.f32 7.917595, %v72_v5  ;;  %vm159_vm2 = vcmp.lt.f32.partialorder %v72_v5, 10.0  ;;  %s130_s12 = sshll.u32 %s302_s11, 4  ;;  %s131_s12 = int_to_ptr.vmem [resolvable:$true] %s130_s12 }
  0x14   :  { %v98_v11 = vsel %vm97_vm0, %v84_v9, 0.0 }
  0x15   :  { %v75_v8 = vadd.f32 1.0, %v74_v6  ;;  %v99_v15 = vrot.slane %v98_v11, 4 }
  0x17   :  { %167 = vlog2.f32 %v75_v8  ;;  %v100_v18 = vadd.f32 %v99_v15, %v98_v11 }
  0x18   :  { %v109_v32 = vld [vmem:[#allocation9] sm:$0x1] }
  0x19   :  { %v101_v22 = vrot.slane %v100_v18, 2  ;;  %v113_v35 = vld [vmem:[#allocation8] sm:$0x1] }
  0x1b   :  { %v102_v25 = vadd.f32 %v101_v22, %v100_v18 }
  0x1d   :  { %v168_v12 = vpop.eup %167  ;;  %v103_v28 = vrot.slane %v102_v25, 1 }
  0x1e   :  { %v77_v13 = vmul.f32 0.6931472, %v168_v12 }
  0x1f   :  { %v104_v30 = vadd.f32 %v103_v28, %v102_v25 }
  0x20   :  { %v78_v16 = vmul.f32 10.0, %v77_v13 }
  0x21   :  { %v106_v31 = vsel %vm105_vm5, %v104_v30, 0.0 }
  0x22   :  { %v80_v17 = vsel %vm159_vm2, %v78_v16, %v160_v14 }
  0x23   :  { %v86_v19 = vsel %vm85_vm3, %v80_v17, 0.0 }
  0x24   :  { %v87_v20 = vrot.slane %v86_v19, 4 }
  0x26   :  { %v88_v21 = vadd.f32 %v87_v20, %v86_v19 }
  0x28   :  { %v89_v23 = vrot.slane %v88_v21, 2 }
  0x2a   :  { %v90_v24 = vadd.f32 %v89_v23, %v88_v21 }
  0x2c   :  { %v91_v26 = vrot.slane %v90_v24, 1 }
  0x2e   :  { %v92_v27 = vadd.f32 %v91_v26, %v90_v24 }
  0x30   :  { %v94_v29 = vsel %vm93_vm4, %v92_v27, 0.0 }
  0x31   :  { %95 = vadd.xlane.f32.xlu0 %v94_v29 }
  0x39   :  { %107 = vadd.xlane.f32.xlu0 %v106_v31 }
  0xa4   :  { %v96_v33 = vpop.xlane.xlu0 %95 }
  0xa5   :  { %v110_v34 = vadd.f32 %v109_v32, %v96_v33 }
  0xa7   :  { %112 = vst.msk [vmem:[#allocation9] sm:$0x1] %vm66_vm1, %v110_v34 }
  0xac   :  { %v108_v36 = vpop.xlane.xlu0 %107 }
  0xad   :  { %v114_v37 = vadd.f32 %v113_v35, %v108_v36 }
  0xae   :  { %v119_v38 = vld [vmem:[#allocation9] sm:$0x1] }
  0xaf   :  { %115 = vst.msk [vmem:[#allocation8] sm:$0x1] %vm66_vm1, %v114_v37  ;;  %v120_v39 = vmul.f32 0.5, %v119_v38 }
  0xb1   :  { %121 = vst.msk [vmem:[#allocation9] sm:$0x1] %vm66_vm1, %v120_v39 }
  0xb2   :  { %146 = dma.vmem_to_hbm [thread:$0]  %s142_s3, 16, %s144_s10, [#allocation10]  }
  0xb6   :  { %v122_v40 = vld [vmem:[#allocation8] sm:$0x1] }
  0xb7   :  { %v123_v41 = vmul.f32 250.0, %v122_v40 }
  0xb9   :  { %124 = vst.msk [vmem:[#allocation8] sm:$0x1] %vm66_vm1, %v123_v41 }
  0xba   :  { %135 = dma.vmem_to_hbm [thread:$0]  %s131_s12, 16, %s133_s15, [#allocation4]  }
  0xbb   :  { %293 = dma.done.wait [#allocation4], 16  }
  0xbc   :  { %294 = vsyncadd [#allocation4], 4294967280 }
  0xbd   :  { %295 = dma.done.wait [#allocation10], 16  }
  0xbe   :  { %296 = vsyncadd [#allocation10], 4294967280 }
  0xbf   :  { %155 = vsyncpa [#allocation3], 1 }
  0xc0   :  { %156 = vsyncpa [#allocation6], 1 }
  0xc1   :  { %157 = vsyncpa [#allocation4], 1 }
  0xc2   :  { %158 = vsyncpa [#allocation10], 1 }

</bundles_post_ra>
